<compile_context>
chip_gen: v7x
topology: tpu7x:2x2x1
jax: 0.10.0
libtpu: 0.0.40
codegen_flags: <defaults>
</compile_context>

<pallas_src>
import functools

import jax
import jax.numpy as jnp
from jax.experimental import pallas as pl
from jax.experimental.pallas import tpu as pltpu


def _round_up(x, m):
    return (x + m - 1) // m * m


def _reduce_neighbors(x, K, D, aggr_method):
    """x: (tile_n, K*D) lane-dense slab -> (tile_n, D) reduction over K."""
    acc = x[:, 0:D]
    if aggr_method == "max":
        for k in range(1, K):
            acc = jnp.maximum(acc, x[:, k * D:(k + 1) * D])
    elif aggr_method in ("sum", "mean"):
        for k in range(1, K):
            acc = acc + x[:, k * D:(k + 1) * D]
        if aggr_method == "mean":
            acc = acc * (1.0 / K)     # compile-time constant, exact for K=2^m
    else:
        raise ValueError(
            "Unknown aggr type, expected sum, max, or mean, but got "
            f"{aggr_method}")
    return acc


def _kernel_no_bias(nf_ref, w_ref, out_ref, *, K, D, aggr_method):
    # nf_ref: (tile_n, K*D)   w_ref: (D, P)   out_ref: (tile_n, P)
    acc = _reduce_neighbors(nf_ref[...], K, D, aggr_method)
    out = jnp.dot(acc, w_ref[...], preferred_element_type=jnp.float32)
    out_ref[...] = out.astype(out_ref.dtype)


def _kernel_with_bias(nf_ref, w_ref, b_ref, out_ref, *, K, D, aggr_method):
    acc = _reduce_neighbors(nf_ref[...], K, D, aggr_method)
    out = jnp.dot(acc, w_ref[...], preferred_element_type=jnp.float32)
    out = out + b_ref[...].astype(out.dtype)
    out_ref[...] = out.astype(out_ref.dtype)


def neighbor_aggregator(neighbor_feature, weight, bias=None,
                        aggr_method="mean", max_tile_n=2048,
                        vmem_budget_bytes=20 * 1024 * 1024):
    """Pallas forward of NeighborAggregator.

    neighbor_feature: (N, K, D)
    weight:           (D, O)
    bias:             (O,) or None
    returns (neighbor_hidden (N, O), aggr_neighbor (N, D))
    """
    N, K, D = neighbor_feature.shape
    Dw, O = weight.shape
    assert Dw == D, "weight.shape[0] must equal input_dim"
    dtype = neighbor_feature.dtype
    itemsize = jnp.dtype(dtype).itemsize

    # Fused, lane-dense projection: [hidden | aggr] = aggr_raw @ [W | I_D],
    # with the column dim padded to a multiple of 128 so the single output
    # store per step is an unmasked full-lane vst.
    P = _round_up(O + D, 128)
    w_fused = jnp.zeros((D, P), dtype=weight.dtype)
    w_fused = w_fused.at[:, :O].set(weight)
    w_fused = w_fused.at[:, O:O + D].set(jnp.eye(D, dtype=weight.dtype))

    # Lane-dense 2-D input slab (last dim K*D instead of a 3-D minor D block).
    nf2d = neighbor_feature.reshape(N, K * D)

    # Size the node tile against a VMEM budget:
    #   input double-buffer  : 2 * tile_n * K*D * itemsize
    #   output double-buffer : 2 * tile_n * P   * itemsize
    #   resident fused weight: 2 * D * P * itemsize   (+ bias)
    per_row = (2 * K * D + 2 * P) * itemsize
    fixed = 2 * D * P * itemsize + 2 * P * itemsize
    avail = max(vmem_budget_bytes - fixed, 8 * per_row)
    tile_n = int(min(max_tile_n, avail // per_row))
    tile_n = max(8, (tile_n // 8) * 8)
    tile_n = min(tile_n, _round_up(N, 8))

    # cdiv-padded grid instead of a hard divisibility assert.
    N_pad = _round_up(N, tile_n)
    if N_pad != N:
        nf2d = jnp.pad(nf2d, ((0, N_pad - N), (0, 0)))
    grid = (N_pad // tile_n,)

    nf_spec = pl.BlockSpec((tile_n, K * D), lambda i: (i, 0))
    # TODO(synk): the fused weight/bias are grid-invariant; single-buffering
    # them (pipeline_mode=pl.Buffered(1)) would save one spare VMEM copy.
    w_spec = pl.BlockSpec((D, P), lambda i: (0, 0))
    out_spec = pl.BlockSpec((tile_n, P), lambda i: (i, 0))
    out_shape = jax.ShapeDtypeStruct((N_pad, P), dtype)

    if bias is not None:
        b_fused = jnp.zeros((1, P), dtype=bias.dtype).at[0, :O].set(bias)
        kernel = functools.partial(_kernel_with_bias, K=K, D=D,
                                   aggr_method=aggr_method)
        in_specs = [nf_spec, w_spec, pl.BlockSpec((1, P), lambda i: (0, 0))]
        args = (nf2d, w_fused, b_fused)
    else:
        kernel = functools.partial(_kernel_no_bias, K=K, D=D,
                                   aggr_method=aggr_method)
        in_specs = [nf_spec, w_spec]
        args = (nf2d, w_fused)

    fused_out = pl.pallas_call(
        kernel,
        out_shape=out_shape,
        grid_spec=pltpu.PrefetchScalarGridSpec(
            num_scalar_prefetch=0,
            grid=grid,
            in_specs=in_specs,
            out_specs=out_spec,
        ),
        compiler_params=pltpu.CompilerParams(
            dimension_semantics=("parallel",),
            vmem_limit_bytes=48 * 1024 * 1024,
        ),
    )(*args)

    neighbor_hidden = fused_out[:N, :O]
    aggr_neighbor = fused_out[:N, O:O + D]
    return neighbor_hidden, aggr_neighbor


def _kaiming_uniform(key, shape):
    # torch.nn.init.kaiming_uniform_ defaults (a=0, fan_in, leaky_relu);
    # bound = sqrt(6 / fan_in).
    fan_in = shape[1]
    bound = (6.0 / fan_in) ** 0.5
    return jax.random.uniform(key, shape, jnp.float32, -bound, bound)


if __name__ == "__main__":
    key = jax.random.PRNGKey(0)
    k_feat, k_w = jax.random.split(key)

    # Small shapes: N nodes, K sampled neighbors, input_dim D, output_dim O.
    N, K, D, O = 16, 8, 32, 32
    neighbor_feature = jax.random.normal(k_feat, (N, K, D), jnp.float32)
    weight = _kaiming_uniform(k_w, (D, O))
    bias = None  # module default use_bias=False

    hidden, aggr = neighbor_aggregator(neighbor_feature, weight, bias,
                                       aggr_method="mean")
    hidden = jax.block_until_ready(hidden)
    aggr = jax.block_until_ready(aggr)

    # Pure-JAX reference check.
    ref_aggr = jnp.mean(neighbor_feature, axis=1)
    ref_hidden = ref_aggr @ weight
    assert jnp.allclose(aggr, ref_aggr, atol=1e-5, rtol=1e-5)
    assert jnp.allclose(hidden, ref_hidden, atol=1e-5, rtol=1e-5)

    print("KERNEL_OK")
</pallas_src>

<mosaic_0001>
module attributes {stable_mosaic.version = 11 : i64} {
  func.func @_kernel_no_bias(%arg0: i32, %arg1: memref<16x256xf32, #tpu.memory_space<vmem>>, %arg2: memref<32x128xf32, #tpu.memory_space<vmem>>, %arg3: memref<16x128xf32, #tpu.memory_space<vmem>>) attributes {dimension_semantics = [#tpu.dimension_semantics<parallel>], iteration_bounds = array<i64: 1>, scalar_prefetch = 0 : i64, scratch_operands = 0 : i64, tpu.core_type = #tpu.core_type<tc>, window_params = [{transform_indices = @transform_0, window_bounds = array<i64: 16, 256>}, {pipeline_mode = #tpu.pipeline_mode<synchronous>, transform_indices = @transform_1, window_bounds = array<i64: 32, 128>}, {transform_indices = @transform_2, window_bounds = array<i64: 16, 128>}]} {
    %c0 = arith.constant 0 : index
    %c0_0 = arith.constant 0 : index
    %0 = vector.load %arg1[%c0, %c0_0] : memref<16x256xf32, #tpu.memory_space<vmem>>, vector<16x256xf32>
    %1 = vector.extract_strided_slice %0 {offsets = [0, 0], sizes = [16, 32], strides = [1, 1]} : vector<16x256xf32> to vector<16x32xf32>
    %2 = vector.extract_strided_slice %0 {offsets = [0, 32], sizes = [16, 32], strides = [1, 1]} : vector<16x256xf32> to vector<16x32xf32>
    %3 = arith.addf %1, %2 : vector<16x32xf32>
    %4 = vector.extract_strided_slice %0 {offsets = [0, 64], sizes = [16, 32], strides = [1, 1]} : vector<16x256xf32> to vector<16x32xf32>
    %5 = arith.addf %3, %4 : vector<16x32xf32>
    %6 = vector.extract_strided_slice %0 {offsets = [0, 96], sizes = [16, 32], strides = [1, 1]} : vector<16x256xf32> to vector<16x32xf32>
    %7 = arith.addf %5, %6 : vector<16x32xf32>
    %8 = vector.extract_strided_slice %0 {offsets = [0, 128], sizes = [16, 32], strides = [1, 1]} : vector<16x256xf32> to vector<16x32xf32>
    %9 = arith.addf %7, %8 : vector<16x32xf32>
    %10 = vector.extract_strided_slice %0 {offsets = [0, 160], sizes = [16, 32], strides = [1, 1]} : vector<16x256xf32> to vector<16x32xf32>
    %11 = arith.addf %9, %10 : vector<16x32xf32>
    %12 = vector.extract_strided_slice %0 {offsets = [0, 192], sizes = [16, 32], strides = [1, 1]} : vector<16x256xf32> to vector<16x32xf32>
    %13 = arith.addf %11, %12 : vector<16x32xf32>
    %14 = vector.extract_strided_slice %0 {offsets = [0, 224], sizes = [16, 32], strides = [1, 1]} : vector<16x256xf32> to vector<16x32xf32>
    %15 = arith.addf %13, %14 : vector<16x32xf32>
    %cst = arith.constant 1.250000e-01 : f32
    %16 = vector.broadcast %cst : f32 to vector<16x32xf32>
    %17 = arith.mulf %15, %16 : vector<16x32xf32>
    %c0_1 = arith.constant 0 : index
    %c0_2 = arith.constant 0 : index
    %18 = vector.load %arg2[%c0_1, %c0_2] : memref<32x128xf32, #tpu.memory_space<vmem>>, vector<32x128xf32>
    %cst_3 = arith.constant dense<0.000000e+00> : vector<16x128xf32>
    %19 = tpu.matmul %17, %18, %cst_3 {dimension_numbers = #tpu.dot_dimension_numbers<[1], [0], [0], [1], [0, 0, 1, 1], [], []>} : vector<16x32xf32>, vector<32x128xf32>, vector<16x128xf32> -> vector<16x128xf32>
    %c0_4 = arith.constant 0 : index
    %c0_5 = arith.constant 0 : index
    %20 = vector.load %arg3[%c0_4, %c0_5] : memref<16x128xf32, #tpu.memory_space<vmem>>, vector<16x128xf32>
    tpu.vector_store %arg3[%c0_4, %c0_5], %19 {strides = array<i32>} : memref<16x128xf32, #tpu.memory_space<vmem>>, vector<16x128xf32>,
    return
  }
  func.func @transform_0(%arg0: i32) -> (i32, i32) {
    %c0_i32 = arith.constant 0 : i32
    %c0_i32_0 = arith.constant 0 : i32
    return %arg0, %c0_i32 : i32, i32
  }
  func.func @transform_1(%arg0: i32) -> (i32, i32) {
    %c0_i32 = arith.constant 0 : i32
    %c0_i32_0 = arith.constant 0 : i32
    %c0_i32_1 = arith.constant 0 : i32
    return %c0_i32, %c0_i32_0 : i32, i32
  }
  func.func @transform_2(%arg0: i32) -> (i32, i32) {
    %c0_i32 = arith.constant 0 : i32
    %c0_i32_0 = arith.constant 0 : i32
    return %arg0, %c0_i32 : i32, i32
  }
}

</mosaic_0001>

<bundles_post_ra>
// kernel: tpu_custom_call.1
= control target key start
LH: loop header
LB: loop body
LE: loop exit
PB: predicated region body
PF: predicated region fallthrough
CT: control target
= control target key end

     0   :  { %7 = vsyncpa [#allocation3], 0  ;;  %s382_s0 = inlined_call_operand.hbm [shape: f32[16,256], index: 0, kind: input, shape index: {}]   ;;  %s383_s1 = inlined_call_operand.hbm [shape: f32[32,128], index: 1, kind: input, shape index: {}]   ;;  %s384_s2 = inlined_call_operand.hbm [shape: f32[16,128], index: 2, kind: output, shape index: {}]  }
   0x1   :  { %8 = vsyncpa [#allocation6], 0 }
   0x2   :  { %9 = vsyncpa [#allocation4], 0  ;;  %s315_s9 = smov [#allocation2]   ;;  %s243_s13 = scalar_lea.hbm %s382_s0, 512 }
   0x3   :  { %s15_s10 = sshll.u32 %s315_s9, 4  ;;  %p244_p0 = scmp.ne.s32.totalorder %s382_s0, %s243_s13  ;;  %s16_s10 = int_to_ptr.vmem [resolvable:$true] %s15_s10 }
   0x4   :  { %p247_p1 = scmp.lt.u32.totalorder %s243_s13, %s382_s0 }
   0x6   :  { %p249_p2 = pnand %p247_p1, %p244_p0 }
   0x8   :  { %252 = shalt.err (!%p249_p2)
}
   0x9   :  { %s253_s18 = scalar_lea.vmem %s16_s10, 512  ;;  %p258_p4 = scmp.lt.s32.totalorder %s16_s10, %s16_s10 }
   0xa   :  { %p254_p3 = scmp.ne.s32.totalorder %s16_s10, %s253_s18  ;;  %p259_p5 = scmp.lt.s32.totalorder %s253_s18, %s253_s18 }
   0xc   :  { %p260_p6 = por %p259_p5, %p258_p4 }
   0xe   :  { %p261_p7 = pnand %p260_p6, %p254_p3 }
  0x10   :  { %264 = shalt.err (!%p261_p7)
}
  0x11   :  { %s316_s19 = smov 256   ;;  %s317_s20 = smov 16  }
  0x12   :  { %21 = dma.hbm_to_vmem [thread:$0]  %s382_s0, 512, %s16_s10, [#allocation3], %s316_s19, %s316_s19, %s317_s20  }
  0x13   :  { %s318_s23 = smov [#allocation5]   ;;  %s265_s27 = scalar_lea.hbm %s383_s1, 512 }
  0x14   :  { %s27_s24 = sshll.u32 %s318_s23, 4  ;;  %p266_p8 = scmp.ne.s32.totalorder %s383_s1, %s265_s27  ;;  %s28_s24 = int_to_ptr.vmem [resolvable:$true] %s27_s24 }
  0x15   :  { %p269_p9 = scmp.lt.u32.totalorder %s265_s27, %s383_s1 }
  0x17   :  { %p271_p10 = pnand %p269_p9, %p266_p8 }
  0x19   :  { %274 = shalt.err (!%p271_p10)
}
  0x1a   :  { %s275_s4 = scalar_lea.vmem %s28_s24, 512  ;;  %p280_p12 = scmp.lt.s32.totalorder %s28_s24, %s28_s24 }
  0x1b   :  { %p276_p11 = scmp.ne.s32.totalorder %s28_s24, %s275_s4  ;;  %p281_p13 = scmp.lt.s32.totalorder %s275_s4, %s275_s4 }
  0x1d   :  { %p282_p0 = por %p281_p13, %p280_p12 }
  0x1f   :  { %p283_p1 = pnand %p282_p0, %p276_p11 }
  0x21   :  { %286 = shalt.err (!%p283_p1)
}
  0x22   :  { %s319_s0 = smov 128   ;;  %s320_s5 = smov 8  }
  0x23   :  { %33 = dma.hbm_to_vmem [thread:$0]  %s383_s1, 512, %s28_s24, [#allocation6], %s319_s0, %s319_s0, %s320_s5  }
  0x24   :  { %309 = dma.done.wait [#allocation3], 512  }
  0x25   :  { %310 = vsyncadd [#allocation3], 4294966784 }
  0x26   :  { %311 = dma.done.wait [#allocation6], 512  }
  0x27   :  { %312 = vsyncadd [#allocation6], 4294966784  ;;  %v40_v0 = vld [vmem:[#allocation2] sm:$0xff]  ;;  %s321_s8 = smov 64   ;;  %s322_s9 = smov 96   ;;  %v42_v1 = vld [vmem:[#allocation2 + $0x10] sm:$0xff] }
  0x28   :  { %54 = vrot.lane.b32.xlu1 %v40_v0, %s321_s8  ;;  %46 = vrot.lane.b32.xlu0 %v40_v0, %s322_s9  ;;  %v100_v2 = vld [vmem:[#allocation5] sm:$0xff]  ;;  %v101_v3 = vld [vmem:[#allocation5 + $0x8] sm:$0xff]  ;;  %v102_v5 = vld [vmem:[#allocation5 + $0x10] sm:$0xff]  ;;  %s323_s1 = smov 32   ;;  %vm104_vm0 = vcmask 261120   ;;  %s324_s10 = smov [#allocation7]  }
  0x29   :  { %v225_v4 = vpack.c.bf16 %v101_v3, %v100_v2  ;;  %v103_v6 = vld [vmem:[#allocation5 + $0x18] sm:$0xff]  ;;  %v41_v9 = vld [vmem:[#allocation2 + $0x8] sm:$0xff]  ;;  %s193_s11 = sshll.u32 %s324_s10, 4  ;;  %s194_s11 = int_to_ptr.vmem [resolvable:$true] %s193_s11 }
  0x2a   :  { %v229_v7 = vpack.c.bf16 %v103_v6, %v102_v5  ;;  %v43_v8 = vld [vmem:[#allocation2 + $0x18] sm:$0xff]  ;;  %s287_s12 = scalar_lea.vmem %s194_s11, 256  ;;  %p292_p3 = scmp.lt.s32.totalorder %s194_s11, %s194_s11 }
  0x2b   :  { %226 = vmatprep.subr.bf16.mxu0 %v225_v4  ;;  %p288_p2 = scmp.ne.s32.totalorder %s194_s11, %s287_s12  ;;  %p293_p4 = scmp.lt.s32.totalorder %s287_s12, %s287_s12 }
  0x2c   :  { %56 = vrot.lane.b32.xlu1 %v42_v1, %s321_s8  ;;  %48 = vrot.lane.b32.xlu0 %v42_v1, %s322_s9 }
  0x2d   :  { %228 = vmatpush3.bf16.msra.mxu0 %v225_v4  ;;  %p294_p5 = por %p293_p4, %p292_p3 }
  0x2e   :  { %230 = vmatprep.subr.bf16.mxu0 %v229_v7 }
  0x2f   :  { %p295_p6 = pnand %p294_p5, %p288_p2 }
  0x30   :  { %64 = vrot.lane.b32.xlu1 %v42_v1, %s323_s1  ;;  %62 = vrot.lane.b32.xlu0 %v40_v0, %s323_s1 }
  0x31   :  { %232 = vmatpush3.bf16.msra.mxu0 %v229_v7 }
  0x34   :  { %76 = vrot.lane.b32.xlu1 %v43_v8, %s322_s9  ;;  %74 = vrot.lane.b32.xlu0 %v41_v9, %s322_s9 }
  0x38   :  { %84 = vrot.lane.b32.xlu1 %v43_v8, %s321_s8  ;;  %82 = vrot.lane.b32.xlu0 %v41_v9, %s321_s8 }
  0x3c   :  { %92 = vrot.lane.b32.xlu1 %v43_v8, %s323_s1  ;;  %90 = vrot.lane.b32.xlu0 %v41_v9, %s323_s1 }
  0x9a   :  { %v55_v10 = vpop.permute.xlu1 %54  ;;  %v47_v11 = vpop.permute.xlu0 %46 }
  0x9b   :  { %v52_v12 = vadd.f32 %v47_v11, %v40_v0 }
  0x9d   :  { %v60_v17 = vadd.f32 %v55_v10, %v52_v12 }
  0x9e   :  { %v57_v13 = vpop.permute.xlu1 %56  ;;  %v49_v14 = vpop.permute.xlu0 %48 }
  0x9f   :  { %v53_v15 = vadd.f32 %v49_v14, %v42_v1 }
  0xa1   :  { %v61_v16 = vadd.f32 %v57_v13, %v53_v15 }
  0xa2   :  { %v65_v18 = vpop.permute.xlu1 %64  ;;  %v63_v19 = vpop.permute.xlu0 %62 }
  0xa3   :  { %v69_v20 = vadd.f32 %v65_v18, %v61_v16  ;;  %v68_v21 = vadd.f32 %v63_v19, %v60_v17 }
  0xa5   :  { %v71_v24 = vadd.f32 %v69_v20, %v43_v8  ;;  %v70_v25 = vadd.f32 %v68_v21, %v41_v9 }
  0xa6   :  { %v77_v22 = vpop.permute.xlu1 %76  ;;  %v75_v23 = vpop.permute.xlu0 %74 }
  0xa7   :  { %v81_v28 = vadd.f32 %v77_v22, %v71_v24  ;;  %v80_v29 = vadd.f32 %v75_v23, %v70_v25 }
  0xaa   :  { %v85_v26 = vpop.permute.xlu1 %84  ;;  %v83_v27 = vpop.permute.xlu0 %82 }
  0xab   :  { %v89_v30 = vadd.f32 %v85_v26, %v81_v28  ;;  %v88_v31 = vadd.f32 %v83_v27, %v80_v29 }
  0xae   :  { %v93_v32 = vpop.permute.xlu1 %92  ;;  %v91_v33 = vpop.permute.xlu0 %90 }
  0xaf   :  { %v97_v34 = vadd.f32 %v93_v32, %v89_v30  ;;  %v96_v35 = vadd.f32 %v91_v33, %v88_v31 }
  0xb1   :  { %v99_v36 = vmul.f32 0.125, %v97_v34  ;;  %v98_v37 = vmul.f32 0.125, %v96_v35 }
  0xb3   :  { %222 = vmatprep.mubr.msk.f32.mxu0 %vm104_vm0, %v98_v37 }
  0xb4   :  { %223 = vmatmul.mubr.msk.f32.vlgmr.msra.gmra.mrb[0].mxu0 %vm104_vm0, %v99_v36 }
 0x187   :  { %v224_v38 = vpop.f32.mrb[0].mxu0 }
 0x188   :  { %187 = vst [vmem:[#allocation7 + $0x8] sm:$0xff] %v224_v38  ;;  %v177_v39 = vpop.f32.mrb[1].mxu0 }
 0x189   :  { %186 = vst [vmem:[#allocation7] sm:$0xff] %v177_v39 }
 0x18a   :  { %298 = shalt.err (!%p295_p6)
}
 0x18b   :  { %s299_s15 = scalar_lea.hbm %s384_s2, 256 }
 0x18c   :  { %p300_p7 = scmp.ne.s32.totalorder %s384_s2, %s299_s15  ;;  %p303_p8 = scmp.lt.u32.totalorder %s299_s15, %s384_s2 }
 0x18e   :  { %p305_p9 = pnand %p303_p8, %p300_p7 }
 0x190   :  { %308 = shalt.err (!%p305_p9)
}
 0x191   :  { %199 = dma.vmem_to_hbm [thread:$0]  %s194_s11, 256, %s384_s2, [#allocation4], %s319_s0, %s319_s0, %s320_s5  }
 0x192   :  { %313 = dma.done.wait [#allocation4], 256  }
 0x193   :  { %314 = vsyncadd [#allocation4], 4294967040 }
 0x194   :  { %203 = vsyncpa [#allocation3], 1 }
 0x195   :  { %204 = vsyncpa [#allocation6], 1 }
 0x196   :  { %205 = vsyncpa [#allocation4], 1 }

</bundles_post_ra>
